<compile_context>
chip_gen: v5e
topology: v5e:2x2
jax: 0.10.0
libtpu: 0.0.40
codegen_flags: <defaults>
</compile_context>

<pallas_src>
import functools

import jax
import jax.numpy as jnp
from jax.experimental import pallas as pl
from jax.experimental.pallas import tpu as pltpu


def _mlp_kernel(*refs, n_layers: int):
    # refs = (x_ref, w0_ref, b0_ref, w1_ref, b1_ref, ..., o_ref)
    x_ref = refs[0]
    o_ref = refs[-1]
    wb_refs = refs[1:-1]

    x = x_ref[...]  # (tm, Din0), native dtype (bf16 stays bf16 for the MXU)
    for i in range(n_layers):
        w_ref = wb_refs[2 * i]      # (Din_i, Dout_i)  -- already transposed in wrapper
        b_ref = wb_refs[2 * i + 1]  # (1, Dout_i)
        # MXU matmul with f32 accumulation; no operand upcast, no transpose.
        y = jnp.dot(x, w_ref[...], preferred_element_type=jnp.float32)
        # Epilogue stays in f32 (v5e has no bf16 VPU path).
        y = y + b_ref[...].astype(jnp.float32)
        if i < n_layers - 1:
            y = jnp.maximum(y, 0.0)
            # Cast once to the next layer's weight dtype to keep the MXU in bf16
            # when bf16 params are used (no-op for f32).
            x = y.astype(wb_refs[2 * (i + 1)].dtype)
        else:
            o_ref[...] = y.astype(o_ref.dtype)


def mlp_forward(x, params):
    """Fused MLP forward. x: (B, Din0); params: list of (W:[Dout,Din], b:[Dout])."""
    B, Din0 = x.shape
    n_layers = len(params)
    Dout_last = params[-1][0].shape[0]

    # Pre-transpose weights once (outside the kernel) -> [Din, Dout]; bias -> [1, Dout].
    wts = [jnp.transpose(w) for (w, _) in params]     # (Din_i, Dout_i)
    bs2 = [b.reshape(1, -1) for (_, b) in params]     # (1, Dout_i)

    # Batch tiling: one grid axis over rows; weights fit VMEM as full blocks.
    tm = B if B <= 512 else 256                       # tm==B or multiple of 8 -> legal block
    grid = (pl.cdiv(B, tm),)

    in_specs = [pl.BlockSpec((tm, Din0), lambda i: (i, 0))]
    flat_inputs = [x]
    for w_t, b2 in zip(wts, bs2):
        din, dout = w_t.shape
        in_specs.append(pl.BlockSpec((din, dout), lambda i: (0, 0)))
        in_specs.append(pl.BlockSpec((1, dout), lambda i: (0, 0)))
        flat_inputs.append(w_t)
        flat_inputs.append(b2)

    out_specs = pl.BlockSpec((tm, Dout_last), lambda i: (i, 0))

    # Advisory cost hint for the XLA scheduler.
    flops = sum(2 * B * w.shape[0] * w.shape[1] for (w, _) in params)
    bytes_accessed = (
        x.size * x.dtype.itemsize
        + sum(w.size * w.dtype.itemsize + b.size * b.dtype.itemsize for (w, b) in params)
        + B * Dout_last * x.dtype.itemsize
    )

    kernel = functools.partial(_mlp_kernel, n_layers=n_layers)
    return pl.pallas_call(
        kernel,
        out_shape=jax.ShapeDtypeStruct((B, Dout_last), x.dtype),
        grid=grid,
        in_specs=in_specs,
        out_specs=out_specs,
        compiler_params=pltpu.CompilerParams(
            dimension_semantics=("parallel",),  # v7x: shard batch blocks across both TCs
        ),
        cost_estimate=pl.CostEstimate(
            flops=flops, transcendentals=0, bytes_accessed=bytes_accessed
        ),
    )(*flat_inputs)
    # TODO(synk): for very large layer widths (e.g. 8k x 8k f32 weights) the full-weight
    # VMEM blocks no longer fit; switch to a per-layer (M, N, K)-tiled kernel with a
    # VMEM accumulator + pl.when epilogue in that regime.


def init_mlp_params(key, n_units):
    """PyTorch nn.Linear-style init: W_i: (n_units[i+1], n_units[i]), b_i: (n_units[i+1],),
    uniform(-1/sqrt(fan_in), 1/sqrt(fan_in))."""
    params = []
    for din, dout in zip(n_units[:-1], n_units[1:]):
        key, kw, kb = jax.random.split(key, 3)
        bound = 1.0 / jnp.sqrt(float(din))
        w = jax.random.uniform(kw, (dout, din), jnp.float32, -bound, bound)
        b = jax.random.uniform(kb, (dout,), jnp.float32, -bound, bound)
        params.append((w, b))
    return params


def mlp_forward_ref(x, params):
    """Pure-JAX reference for verification."""
    n_layers = len(params)
    for i, (w, b) in enumerate(params):
        x = x @ w.T + b
        if i < n_layers - 1:
            x = jnp.maximum(x, 0.0)
    return x


if __name__ == "__main__":
    key = jax.random.PRNGKey(0)
    key, kx = jax.random.split(key)

    # MLP([16, 32, 32, 8]): 2 hidden layers of width 32 with ReLU, linear output.
    n_units = [16, 32, 32, 8]
    batch = 8

    x = jax.random.normal(kx, (batch, n_units[0]), jnp.float32)
    params = init_mlp_params(key, n_units)

    out = mlp_forward(x, params)
    out = jax.block_until_ready(out)

    ref = mlp_forward_ref(x, params)
    assert out.shape == (batch, n_units[-1])
    assert jnp.allclose(out, ref, atol=1e-5, rtol=1e-5), "mismatch vs reference"

    print("KERNEL_OK")
</pallas_src>

<mosaic_0001>
module attributes {stable_mosaic.version = 11 : i64} {
  func.func @_mlp_kernel(%arg0: i32, %arg1: memref<8x16xf32, #tpu.memory_space<vmem>>, %arg2: memref<16x32xf32, #tpu.memory_space<vmem>>, %arg3: memref<1x32xf32, #tpu.memory_space<vmem>>, %arg4: memref<32x32xf32, #tpu.memory_space<vmem>>, %arg5: memref<1x32xf32, #tpu.memory_space<vmem>>, %arg6: memref<32x8xf32, #tpu.memory_space<vmem>>, %arg7: memref<1x8xf32, #tpu.memory_space<vmem>>, %arg8: memref<8x8xf32, #tpu.memory_space<vmem>>) attributes {dimension_semantics = [#tpu.dimension_semantics<parallel>], iteration_bounds = array<i64: 1>, scalar_prefetch = 0 : i64, scratch_operands = 0 : i64, tpu.core_type = #tpu.core_type<tc>, window_params = [{transform_indices = @transform_0, window_bounds = array<i64: 8, 16>}, {pipeline_mode = #tpu.pipeline_mode<synchronous>, transform_indices = @transform_1, window_bounds = array<i64: 16, 32>}, {pipeline_mode = #tpu.pipeline_mode<synchronous>, transform_indices = @transform_2, window_bounds = array<i64: 1, 32>}, {pipeline_mode = #tpu.pipeline_mode<synchronous>, transform_indices = @transform_3, window_bounds = array<i64: 32, 32>}, {pipeline_mode = #tpu.pipeline_mode<synchronous>, transform_indices = @transform_4, window_bounds = array<i64: 1, 32>}, {pipeline_mode = #tpu.pipeline_mode<synchronous>, transform_indices = @transform_5, window_bounds = array<i64: 32, 8>}, {pipeline_mode = #tpu.pipeline_mode<synchronous>, transform_indices = @transform_6, window_bounds = array<i64: 1, 8>}, {transform_indices = @transform_7, window_bounds = array<i64: 8, 8>}]} {
    %c0 = arith.constant 0 : index
    %c0_0 = arith.constant 0 : index
    %0 = vector.load %arg1[%c0, %c0_0] : memref<8x16xf32, #tpu.memory_space<vmem>>, vector<8x16xf32>
    %c0_1 = arith.constant 0 : index
    %c0_2 = arith.constant 0 : index
    %1 = vector.load %arg2[%c0_1, %c0_2] : memref<16x32xf32, #tpu.memory_space<vmem>>, vector<16x32xf32>
    %cst = arith.constant dense<0.000000e+00> : vector<8x32xf32>
    %2 = tpu.matmul %0, %1, %cst {dimension_numbers = #tpu.dot_dimension_numbers<[1], [0], [0], [1], [0, 0, 1, 1], [], []>} : vector<8x16xf32>, vector<16x32xf32>, vector<8x32xf32> -> vector<8x32xf32>
    %c0_3 = arith.constant 0 : index
    %c0_4 = arith.constant 0 : index
    %3 = vector.load %arg3[%c0_3, %c0_4] : memref<1x32xf32, #tpu.memory_space<vmem>>, vector<1x32xf32>
    %4 = vector.broadcast %3 : vector<1x32xf32> to vector<8x32xf32>
    %5 = arith.addf %2, %4 : vector<8x32xf32>
    %cst_5 = arith.constant 0.000000e+00 : f32
    %6 = vector.broadcast %cst_5 : f32 to vector<8x32xf32>
    %7 = arith.maximumf %5, %6 : vector<8x32xf32>
    %c0_6 = arith.constant 0 : index
    %c0_7 = arith.constant 0 : index
    %8 = vector.load %arg4[%c0_6, %c0_7] : memref<32x32xf32, #tpu.memory_space<vmem>>, vector<32x32xf32>
    %cst_8 = arith.constant dense<0.000000e+00> : vector<8x32xf32>
    %9 = tpu.matmul %7, %8, %cst_8 {dimension_numbers = #tpu.dot_dimension_numbers<[1], [0], [0], [1], [0, 0, 1, 1], [], []>} : vector<8x32xf32>, vector<32x32xf32>, vector<8x32xf32> -> vector<8x32xf32>
    %c0_9 = arith.constant 0 : index
    %c0_10 = arith.constant 0 : index
    %10 = vector.load %arg5[%c0_9, %c0_10] : memref<1x32xf32, #tpu.memory_space<vmem>>, vector<1x32xf32>
    %11 = vector.broadcast %10 : vector<1x32xf32> to vector<8x32xf32>
    %12 = arith.addf %9, %11 : vector<8x32xf32>
    %cst_11 = arith.constant 0.000000e+00 : f32
    %13 = vector.broadcast %cst_11 : f32 to vector<8x32xf32>
    %14 = arith.maximumf %12, %13 : vector<8x32xf32>
    %c0_12 = arith.constant 0 : index
    %c0_13 = arith.constant 0 : index
    %15 = vector.load %arg6[%c0_12, %c0_13] : memref<32x8xf32, #tpu.memory_space<vmem>>, vector<32x8xf32>
    %cst_14 = arith.constant dense<0.000000e+00> : vector<8x8xf32>
    %16 = tpu.matmul %14, %15, %cst_14 {dimension_numbers = #tpu.dot_dimension_numbers<[1], [0], [0], [1], [0, 0, 1, 1], [], []>} : vector<8x32xf32>, vector<32x8xf32>, vector<8x8xf32> -> vector<8x8xf32>
    %c0_15 = arith.constant 0 : index
    %c0_16 = arith.constant 0 : index
    %17 = vector.load %arg7[%c0_15, %c0_16] : memref<1x8xf32, #tpu.memory_space<vmem>>, vector<1x8xf32>
    %18 = vector.broadcast %17 : vector<1x8xf32> to vector<8x8xf32>
    %19 = arith.addf %16, %18 : vector<8x8xf32>
    %c0_17 = arith.constant 0 : index
    %c0_18 = arith.constant 0 : index
    %20 = vector.load %arg8[%c0_17, %c0_18] : memref<8x8xf32, #tpu.memory_space<vmem>>, vector<8x8xf32>
    tpu.vector_store %arg8[%c0_17, %c0_18], %19 {strides = array<i32>} : memref<8x8xf32, #tpu.memory_space<vmem>>, vector<8x8xf32>,
    return
  }
  func.func @transform_0(%arg0: i32) -> (i32, i32) {
    %c0_i32 = arith.constant 0 : i32
    %c0_i32_0 = arith.constant 0 : i32
    return %arg0, %c0_i32 : i32, i32
  }
  func.func @transform_1(%arg0: i32) -> (i32, i32) {
    %c0_i32 = arith.constant 0 : i32
    %c0_i32_0 = arith.constant 0 : i32
    %c0_i32_1 = arith.constant 0 : i32
    return %c0_i32, %c0_i32_0 : i32, i32
  }
  func.func @transform_2(%arg0: i32) -> (i32, i32) {
    %c0_i32 = arith.constant 0 : i32
    %c0_i32_0 = arith.constant 0 : i32
    %c0_i32_1 = arith.constant 0 : i32
    return %c0_i32, %c0_i32_0 : i32, i32
  }
  func.func @transform_3(%arg0: i32) -> (i32, i32) {
    %c0_i32 = arith.constant 0 : i32
    %c0_i32_0 = arith.constant 0 : i32
    %c0_i32_1 = arith.constant 0 : i32
    return %c0_i32, %c0_i32_0 : i32, i32
  }
  func.func @transform_4(%arg0: i32) -> (i32, i32) {
    %c0_i32 = arith.constant 0 : i32
    %c0_i32_0 = arith.constant 0 : i32
    %c0_i32_1 = arith.constant 0 : i32
    return %c0_i32, %c0_i32_0 : i32, i32
  }
  func.func @transform_5(%arg0: i32) -> (i32, i32) {
    %c0_i32 = arith.constant 0 : i32
    %c0_i32_0 = arith.constant 0 : i32
    %c0_i32_1 = arith.constant 0 : i32
    return %c0_i32, %c0_i32_0 : i32, i32
  }
  func.func @transform_6(%arg0: i32) -> (i32, i32) {
    %c0_i32 = arith.constant 0 : i32
    %c0_i32_0 = arith.constant 0 : i32
    %c0_i32_1 = arith.constant 0 : i32
    return %c0_i32, %c0_i32_0 : i32, i32
  }
  func.func @transform_7(%arg0: i32) -> (i32, i32) {
    %c0_i32 = arith.constant 0 : i32
    %c0_i32_0 = arith.constant 0 : i32
    return %arg0, %c0_i32 : i32, i32
  }
}

</mosaic_0001>

<bundles_post_ra>
// kernel: tpu_custom_call.1
= control target key start
LH: loop header
LB: loop body
LE: loop exit
PB: predicated region body
PF: predicated region fallthrough
CT: control target
= control target key end

     0   :  { %12 = vsyncpa [#allocation3], 0  ;;  %s306_s0 = inlined_call_operand.vmem [shape: f32[8,16], index: 0, kind: input, shape index: {}]   ;;  %s307_s1 = inlined_call_operand.hbm [shape: f32[16,32], index: 1, kind: input, shape index: {}]   ;;  %s308_s2 = inlined_call_operand.vmem [shape: f32[1,32], index: 2, kind: input, shape index: {}]   ;;  %s309_s3 = inlined_call_operand.vmem [shape: f32[32,32], index: 3, kind: input, shape index: {}]   ;;  %s310_s4 = inlined_call_operand.vmem [shape: f32[1,32], index: 4, kind: input, shape index: {}]   ;;  %s311_s5 = inlined_call_operand.vmem [shape: f32[32,8], index: 5, kind: input, shape index: {}]   ;;  %s312_s6 = inlined_call_operand.vmem [shape: f32[1,8], index: 6, kind: input, shape index: {}]   ;;  %s313_s7 = inlined_call_operand.hbm [shape: f32[8,8], index: 7, kind: output, shape index: {}]  }
   0x1   :  { %13 = vsyncpa [#allocation4], 0  ;;  %s20_s26 = sshll.u32 %s307_s1, 4  ;;  %s220_s27 = smov [#allocation2]   ;;  %s21_s26 = int_to_ptr.hbm [resolvable:$true] %s20_s26 }
   0x2   :  { %s22_s28 = sshll.u32 %s220_s27, 4  ;;  %s221_s29 = smov 128   ;;  %s23_s28 = int_to_ptr.vmem [resolvable:$true] %s22_s28 }
   0x3   :  { %s222_s30 = smov 8  }
   0x4   :  { %28 = dma.hbm_to_vmem [thread:$0]  %s21_s26, 256, %s23_s28, [#allocation3], %s221_s29, %s221_s29, %s222_s30  }
   0x5   :  { %216 = dma.done.wait [#allocation3], 256  }
   0x6   :  { %217 = vsyncadd [#allocation3], 4294967040  ;;  %v45_v0 = vld [vmem:[#allocation2 + $0x8] sm:$0xff]  ;;  %v44_v1 = vld [vmem:[#allocation2] sm:$0xff]  ;;  %vm50_vm0 = vcmask 130048   ;;  %vm83_vm1 = vcmask 261120  }
   0x7   :  { %68 = vmatpush.msra.mxu0 %v45_v0  ;;  %v43_v2 = vld [vmem:[%s306_s0] sm:$0xff]  ;;  %v78_v3 = vld [vmem:[%s309_s3 + $0x18] sm:$0xff]  ;;  %v77_v4 = vld [vmem:[%s309_s3 + $0x10] sm:$0xff]  ;;  %s223_s28 = smov [#allocation5]   ;;  %s148_s9 = sshll.u32 %s313_s7, 4  ;;  %vm139_vm2 = vcmask 64512   ;;  %s149_s9 = int_to_ptr.hbm [resolvable:$true] %s148_s9 }
   0x8   :  { %99 = vmatpush.msra.mxu1 %v78_v3  ;;  %v76_v5 = vld [vmem:[%s309_s3 + $0x8] sm:$0xff]  ;;  %v75_v6 = vld [vmem:[%s309_s3] sm:$0xff]  ;;  %v111_v7 = vld [vmem:[%s311_s5 + $0x18] sm:$0xff]  ;;  %s146_s29 = sshll.u32 %s223_s28, 4  ;;  %s147_s29 = int_to_ptr.vmem [resolvable:$true] %s146_s29 }
   0x9   :  { %69 = vmatpush.msra.mxu0 %v44_v1  ;;  %131 = vmatpush.msra.mxu2 %v111_v7  ;;  %v165_v8 = vld [vmem:[%s308_s2] ss:$0 sm:$0xff]  ;;  %v110_v12 = vld [vmem:[%s311_s5 + $0x10] sm:$0xff]  ;;  %v109_v13 = vld [vmem:[%s311_s5 + $0x8] sm:$0xff] }
   0xa   :  { %158 = vmatmul.msk.f32.vlgmr.msra.gmra.mxu0 %vm50_vm0, %v43_v2  ;;  %100 = vmatpush.msra.mxu1 %v77_v4  ;;  %v108_v14 = vld [vmem:[%s311_s5] sm:$0xff] }
   0xb   :  { %132 = vmatpush.msra.mxu2 %v110_v12  ;;  %v166_v15 = vld [vmem:[%s310_s4] ss:$0 sm:$0xff] }
   0xc   :  { %101 = vmatpush.msra.mxu1 %v76_v5  ;;  %v167_v19 = vld [vmem:[%s312_s6] ss:$0 sm:$0xff] }
   0xd   :  { %133 = vmatpush.msra.mxu2 %v109_v13 }
   0xe   :  { %102 = vmatpush.msra.mxu1 %v75_v6 }
   0xf   :  { %134 = vmatpush.msra.mxu2 %v108_v14 }
  0x87   :  { %v71_v9 = vpop.f32.mrf.mxu0 }
  0x88   :  { %v72_v10 = vadd.f32 %v165_v8, %v71_v9 }
  0x8a   :  { %v74_v11 = vmax.f32 %v72_v10, 0.0 }
  0x8c   :  { %159 = vmatmul.msk.f32.vlgmr.msra.gmra.mxu1 %vm83_vm1, %v74_v11 }
 0x109   :  { %v104_v16 = vpop.f32.mrf.mxu1 }
 0x10a   :  { %v105_v17 = vadd.f32 %v166_v15, %v104_v16 }
 0x10c   :  { %v107_v18 = vmax.f32 %v105_v17, 0.0 }
 0x10e   :  { %160 = vmatmul.msk.f32.vlgmr.msra.gmra.mxu2 %vm83_vm1, %v107_v18 }
 0x191   :  { %v136_v20 = vpop.f32.mrf.mxu2 }
 0x192   :  { %v137_v21 = vadd.f32 %v167_v19, %v136_v20 }
 0x194   :  { %140 = vst.msk [vmem:[#allocation5] sm:$0xff] %vm139_vm2, %v137_v21 }
 0x195   :  { %151 = dma.vmem_to_hbm [thread:$0]  %s147_s29, 128, %s149_s9, [#allocation4]  }
 0x196   :  { %218 = dma.done.wait [#allocation4], 128  }
 0x197   :  { %219 = vsyncadd [#allocation4], 4294967168 }
 0x198   :  { %156 = vsyncpa [#allocation3], 1 }
 0x199   :  { %157 = vsyncpa [#allocation4], 1 }

</bundles_post_ra>
